<compile_context>
chip_gen: v5e
topology: v5e:2x2
jax: 0.10.0
libtpu: 0.0.40
codegen_flags: <defaults>
</compile_context>

<pallas_src>
import functools

import jax
import jax.numpy as jnp
from jax.experimental import pallas as pl
from jax.experimental.pallas import tpu as pltpu

_LANE = 128
_SUBLANE = 8


def _round_up(a, b):
    return (a + b - 1) // b * b


def _pick_tiles(n_rows, hw):
    """(row_tile, lane_tile): 8-sublane-dense rows, 128-lane-dense tiles,
    ~2 MiB per input stream per grid step (sized for v7x VMEM; fine on v5e/v6e)."""
    target_elems = (2 * 1024 * 1024) // 4             # f32 elements / stream / step
    if hw <= 4 * _LANE:
        lane_t = hw                                    # single full-extent lane tile
    else:
        cap = max(_LANE, min(target_elems // _SUBLANE, 65536) // _LANE * _LANE)
        lane_t = min((hw // _LANE) * _LANE, cap)
    row_t = min(n_rows,
                max(_SUBLANE, (target_elems // max(lane_t, 1)) // _SUBLANE * _SUBLANE))
    if n_rows >= 2 * _SUBLANE:
        # keep >= 2 row blocks so the "parallel" row axis can feed both v7x TensorCores
        row_t = min(row_t, max(_SUBLANE, (n_rows // 2) // _SUBLANE * _SUBLANE))
    if row_t < n_rows:
        row_t = max(_SUBLANE, (row_t // _SUBLANE) * _SUBLANE)
    return row_t, lane_t


# ---------------------------------------------------------------------------
# Pass 1: per-row partial moments, accumulated over lane tiles
# ---------------------------------------------------------------------------
def _stats_kernel(xr_ref, xi_ref, sums_ref, *, hw, lane_tile, need_mask):
    """xr/xi: (TR, T) tiles; sums: (TR, 8) resident accumulator.

    lanes of sums: [Σxr, Σxi, Σxr², Σxi², Σxr·xi, 0, 0, 0]
    """
    j = pl.program_id(1)
    xr = xr_ref[...]
    xi = xi_ref[...]
    if need_mask:  # ragged last lane tile: zero out-of-range lanes (select, NaN-safe)
        lane = jax.lax.broadcasted_iota(jnp.int32, xr.shape, 1)
        valid = (lane + j * lane_tile) < hw
        xr = jnp.where(valid, xr, 0.0)
        xi = jnp.where(valid, xi, 0.0)
    zeros = jnp.zeros((xr.shape[0], 1), jnp.float32)
    partial = jnp.concatenate(
        [jnp.sum(xr, axis=-1, keepdims=True),
         jnp.sum(xi, axis=-1, keepdims=True),
         jnp.sum(xr * xr, axis=-1, keepdims=True),
         jnp.sum(xi * xi, axis=-1, keepdims=True),
         jnp.sum(xr * xi, axis=-1, keepdims=True),
         zeros, zeros, zeros],
        axis=-1)                                   # (TR, 8)

    @pl.when(j == 0)
    def _():
        sums_ref[...] = partial

    @pl.when(j > 0)
    def _():
        sums_ref[...] = sums_ref[...] + partial


# ---------------------------------------------------------------------------
# Pass 2: fused whitening + affine
#   yr = xr*m00 + xi*m01 + c0 ;  yi = xr*m10 + xi*m11 + c1
# ---------------------------------------------------------------------------
def _apply_kernel(coef_ref, xr_ref, xi_ref, yr_ref, yi_ref):
    xr = xr_ref[...]
    xi = xi_ref[...]
    c = coef_ref[...]                              # (TR, 8) per-row coefficients
    yr_ref[...] = xr * c[:, 0:1] + xi * c[:, 1:2] + c[:, 4:5]
    yi_ref[...] = xr * c[:, 2:3] + xi * c[:, 3:4] + c[:, 5:6]


@functools.partial(jax.jit, static_argnames=("training", "momentum", "eps"))
def complex_batch_norm(x, weight, bias, running_mean, running_var,
                       *, training=True, momentum=0.1, eps=1e-5):
    """Forward of complextorch `_BatchNorm` (2d variant).

    x            : complex64 (N, C, H, W)
    weight       : float32  (2, 2, C)   or None
    bias         : float32  (2, C)      or None
    running_mean : float32  (2, C)      or None
    running_var  : float32  (2, 2, C)   or None
    Returns (y, new_running_mean, new_running_var).
    """
    N, C, H, W = x.shape
    HW = H * W
    R = N * C
    L = N * HW

    # Planar f32 views in natural row-major (N*C, HW) layout (reshape is free).  Under
    # jit the real/imag split fuses into one pass; allow_input_fusion additionally lets
    # XLA fold it straight into the kernels' input pipelines.
    # TODO(synk): a zero-copy complex64<->f32 bitcast is not expressible in JAX
    # (lax.bitcast_convert_type rejects complex dtypes), so one conversion pass remains.
    xr = jnp.real(x).reshape(R, HW).astype(jnp.float32)
    xi = jnp.imag(x).reshape(R, HW).astype(jnp.float32)

    TR, T = _pick_tiles(R, HW)
    grid = (pl.cdiv(R, TR), pl.cdiv(HW, T))
    need_mask = (HW % T) != 0
    tile_bytes = TR * T * 4
    vmem_limit = int(min(48 * 2**20, max(32 * 2**20, 12 * tile_bytes)))

    cparams_stats = pltpu.CompilerParams(
        dimension_semantics=("parallel", "arbitrary"),
        vmem_limit_bytes=vmem_limit,
        allow_input_fusion=[True, True])
    cparams_apply = pltpu.CompilerParams(
        dimension_semantics=("parallel", "parallel"),
        vmem_limit_bytes=vmem_limit,
        allow_input_fusion=[False, True, True])

    use_batch_stats = training or running_mean is None or running_var is None

    if use_batch_stats:
        row_sums = pl.pallas_call(
            functools.partial(_stats_kernel, hw=HW, lane_tile=T, need_mask=need_mask),
            grid=grid,
            in_specs=[pl.BlockSpec((TR, T), lambda i, j: (i, j)),
                      pl.BlockSpec((TR, T), lambda i, j: (i, j))],
            out_specs=pl.BlockSpec((TR, 8), lambda i, j: (i, 0)),
            out_shape=jax.ShapeDtypeStruct((R, 8), jnp.float32),
            compiler_params=cparams_stats,
        )(xr, xi)

        sums = jnp.sum(row_sums.reshape(N, C, 8), axis=0)            # (C, 8)
        inv_n = 1.0 / L
        mu_r = sums[:, 0] * inv_n
        mu_i = sums[:, 1] * inv_n
        # One-pass moments; clamp against catastrophic cancellation (PSD in exact math).
        vrr = jnp.maximum(sums[:, 2] * inv_n - mu_r * mu_r, 0.0)     # eps-FREE covariance
        vii = jnp.maximum(sums[:, 3] * inv_n - mu_i * mu_i, 0.0)
        vri = sums[:, 4] * inv_n - mu_r * mu_i

        if training and running_mean is not None and running_var is not None:
            # TODO(synk): complextorch EMAs the biased (population) covariance here;
            # switch to the unbiased L/(L-1) estimate if the upstream convention differs.
            mean_b = jnp.stack([mu_r, mu_i], axis=0)                               # (2, C)
            cov_b = jnp.stack([jnp.stack([vrr, vri]), jnp.stack([vri, vii])])      # (2,2,C)
            new_running_mean = running_mean + momentum * (mean_b - running_mean)
            new_running_var = running_var + momentum * (cov_b - running_var)
        else:
            new_running_mean, new_running_var = running_mean, running_var
    else:
        mu_r = running_mean[0]
        mu_i = running_mean[1]
        vrr = running_var[0, 0]
        vii = running_var[1, 1]
        vri = 0.5 * (running_var[0, 1] + running_var[1, 0])
        new_running_mean, new_running_var = running_mean, running_var

    # --- O(C) bookkeeping: inverse sqrt of [[vrr+eps, vri],[vri, vii+eps]] ---
    a = vrr + eps
    d = vii + eps
    det = jnp.maximum(a * d - vri * vri, 1e-30)          # guard rounding-induced negatives
    sqrdet = jnp.sqrt(det)
    inv_denom = 1.0 / (sqrdet * jnp.sqrt(a + 2.0 * sqrdet + d))
    p = (d + sqrdet) * inv_denom
    q = -vri * inv_denom
    r = -vri * inv_denom
    s = (a + sqrdet) * inv_denom

    # fold affine 2x2 + bias into the whitening:  y = W·(R·(x - mu)) + b = M x + c
    if weight is not None:
        w00, w01 = weight[0, 0].astype(jnp.float32), weight[0, 1].astype(jnp.float32)
        w10, w11 = weight[1, 0].astype(jnp.float32), weight[1, 1].astype(jnp.float32)
    else:
        one = jnp.ones((C,), jnp.float32)
        zero_ = jnp.zeros((C,), jnp.float32)
        w00, w01, w10, w11 = one, zero_, zero_, one
    if bias is not None:
        b0, b1 = bias[0].astype(jnp.float32), bias[1].astype(jnp.float32)
    else:
        b0 = b1 = jnp.zeros((C,), jnp.float32)

    m00 = w00 * p + w01 * q
    m01 = w00 * r + w01 * s
    m10 = w10 * p + w11 * q
    m11 = w10 * r + w11 * s
    c0 = b0 - mu_r * m00 - mu_i * m01
    c1 = b1 - mu_r * m10 - mu_i * m11
    zero = jnp.zeros_like(m00)
    coef = jnp.stack([m00, m01, m10, m11, c0, c1, zero, zero], axis=-1)   # (C, 8)
    coef_rows = jnp.tile(coef, (N, 1)).astype(jnp.float32)                # (N*C, 8)

    yr, yi = pl.pallas_call(
        _apply_kernel,
        grid=grid,
        in_specs=[pl.BlockSpec((TR, 8), lambda i, j: (i, 0)),
                  pl.BlockSpec((TR, T), lambda i, j: (i, j)),
                  pl.BlockSpec((TR, T), lambda i, j: (i, j))],
        out_specs=(pl.BlockSpec((TR, T), lambda i, j: (i, j)),
                   pl.BlockSpec((TR, T), lambda i, j: (i, j))),
        out_shape=(jax.ShapeDtypeStruct((R, HW), jnp.float32),
                   jax.ShapeDtypeStruct((R, HW), jnp.float32)),
        compiler_params=cparams_apply,
    )(coef_rows, xr, xi)

    # TODO(synk): the interleave back to complex64 is one extra (fused) XLA pass; no
    # zero-copy f32->complex64 bitcast exists in JAX.
    y = jax.lax.complex(yr, yi).reshape(N, C, H, W)
    return y, new_running_mean, new_running_var


def _reference(x, weight, bias, eps, mean=None, cov=None):
    """Pure-jnp reference of the same whitening BN (training or running-stat path)."""
    xr = jnp.real(x).astype(jnp.float32)
    xi = jnp.imag(x).astype(jnp.float32)
    axes = (0, 2, 3)
    bc = lambda v: v[None, :, None, None]
    if mean is None:
        mu_r, mu_i = xr.mean(axes), xi.mean(axes)
    else:
        mu_r, mu_i = mean[0], mean[1]
    cr = xr - bc(mu_r)
    ci = xi - bc(mu_i)
    if cov is None:
        vrr = (cr * cr).mean(axes)
        vii = (ci * ci).mean(axes)
        vri = (cr * ci).mean(axes)
    else:
        vrr, vii = cov[0, 0], cov[1, 1]
        vri = 0.5 * (cov[0, 1] + cov[1, 0])
    a, d = vrr + eps, vii + eps
    sqrdet = jnp.sqrt(a * d - vri * vri)
    denom = sqrdet * jnp.sqrt(a + 2.0 * sqrdet + d)
    p, s = (d + sqrdet) / denom, (a + sqrdet) / denom
    q = r = -vri / denom
    zr = cr * bc(p) + ci * bc(r)
    zi = cr * bc(q) + ci * bc(s)
    yr = zr * bc(weight[0, 0]) + zi * bc(weight[0, 1]) + bc(bias[0])
    yi = zr * bc(weight[1, 0]) + zi * bc(weight[1, 1]) + bc(bias[1])
    return jax.lax.complex(yr, yi)


if __name__ == "__main__":
    N, C, H, W = 2, 4, 16, 16
    eps = 1e-5
    momentum = 0.1

    key = jax.random.PRNGKey(0)
    kr, ki = jax.random.split(key)
    x_real = jax.random.normal(kr, (N, C, H, W), jnp.float32) * 1.5 + 0.3
    x_imag = jax.random.normal(ki, (N, C, H, W), jnp.float32) * 0.7 - 0.1
    x = jax.lax.complex(x_real, x_imag)

    # deterministic init, as _BatchNorm.reset_parameters / reset_running_stats
    eye2 = jnp.eye(2, dtype=jnp.float32)
    weight = 0.70710678118 * jnp.broadcast_to(eye2[:, :, None], (2, 2, C))
    bias = jnp.zeros((2, C), jnp.float32)
    running_mean = jnp.zeros((2, C), jnp.float32)
    running_var = jnp.broadcast_to(eye2[:, :, None], (2, 2, C))

    # --- training-mode forward ---
    y, new_rm, new_rv = complex_batch_norm(
        x, weight, bias, running_mean, running_var,
        training=True, momentum=momentum, eps=eps)
    jax.block_until_ready((y, new_rm, new_rv))

    y_ref = _reference(x, weight, bias, eps)
    assert y.shape == (N, C, H, W) and y.dtype == jnp.complex64
    assert jnp.allclose(y.real, y_ref.real, atol=1e-4, rtol=1e-4)
    assert jnp.allclose(y.imag, y_ref.imag, atol=1e-4, rtol=1e-4)

    # reference running-stat EMA (eps-free batch covariance)
    xr_f = jnp.real(x)
    xi_f = jnp.imag(x)
    axes = (0, 2, 3)
    mu_ref = jnp.stack([xr_f.mean(axes), xi_f.mean(axes)])
    cr = xr_f - mu_ref[0][None, :, None, None]
    ci = xi_f - mu_ref[1][None, :, None, None]
    cov_ref = jnp.stack([jnp.stack([(cr * cr).mean(axes), (cr * ci).mean(axes)]),
                         jnp.stack([(cr * ci).mean(axes), (ci * ci).mean(axes)])])
    rm_ref = running_mean + momentum * (mu_ref - running_mean)
    rv_ref = running_var + momentum * (cov_ref - running_var)
    assert jnp.allclose(new_rm, rm_ref, atol=1e-4, rtol=1e-4)
    assert jnp.allclose(new_rv, rv_ref, atol=1e-4, rtol=1e-4)

    # --- eval-mode forward (whiten with updated running stats, no EMA update) ---
    y_ev, rm2, rv2 = complex_batch_norm(
        x, weight, bias, new_rm, new_rv,
        training=False, momentum=momentum, eps=eps)
    jax.block_until_ready(y_ev)
    y_ev_ref = _reference(x, weight, bias, eps, mean=new_rm, cov=new_rv)
    assert jnp.allclose(y_ev.real, y_ev_ref.real, atol=1e-4, rtol=1e-4)
    assert jnp.allclose(y_ev.imag, y_ev_ref.imag, atol=1e-4, rtol=1e-4)
    assert jnp.allclose(rm2, new_rm) and jnp.allclose(rv2, new_rv)

    print("KERNEL_OK")
</pallas_src>

<mosaic_0001>
module attributes {stable_mosaic.version = 11 : i64} {
  func.func @_stats_kernel(%arg0: i32, %arg1: i32, %arg2: memref<8x256xf32, #tpu.memory_space<vmem>>, %arg3: memref<8x256xf32, #tpu.memory_space<vmem>>, %arg4: memref<8x8xf32, #tpu.memory_space<vmem>>) attributes {dimension_semantics = [#tpu.dimension_semantics<parallel>, #tpu.dimension_semantics<arbitrary>], iteration_bounds = array<i64: 1, 1>, scalar_prefetch = 0 : i64, scratch_operands = 0 : i64, tpu.core_type = #tpu.core_type<tc>, window_params = [{transform_indices = @transform_0, window_bounds = array<i64: 8, 256>}, {transform_indices = @transform_1, window_bounds = array<i64: 8, 256>}, {transform_indices = @transform_2, window_bounds = array<i64: 8, 8>}]} {
    %c0 = arith.constant 0 : index
    %c0_0 = arith.constant 0 : index
    %0 = vector.load %arg2[%c0, %c0_0] : memref<8x256xf32, #tpu.memory_space<vmem>>, vector<8x256xf32>
    %c0_1 = arith.constant 0 : index
    %c0_2 = arith.constant 0 : index
    %1 = vector.load %arg3[%c0_1, %c0_2] : memref<8x256xf32, #tpu.memory_space<vmem>>, vector<8x256xf32>
    %cst = arith.constant 0.000000e+00 : f32
    %2 = vector.broadcast %cst : f32 to vector<8x1xf32>
    %cst_3 = arith.constant dense<0.000000e+00> : vector<8xf32>
    %3 = vector.multi_reduction <add>, %0, %cst_3 [1] : vector<8x256xf32> to vector<8xf32>
    %4 = vector.shape_cast %3 : vector<8xf32> to vector<8x1xf32>
    %cst_4 = arith.constant dense<0.000000e+00> : vector<8xf32>
    %5 = vector.multi_reduction <add>, %1, %cst_4 [1] : vector<8x256xf32> to vector<8xf32>
    %6 = vector.shape_cast %5 : vector<8xf32> to vector<8x1xf32>
    %7 = arith.mulf %0, %0 : vector<8x256xf32>
    %cst_5 = arith.constant dense<0.000000e+00> : vector<8xf32>
    %8 = vector.multi_reduction <add>, %7, %cst_5 [1] : vector<8x256xf32> to vector<8xf32>
    %9 = vector.shape_cast %8 : vector<8xf32> to vector<8x1xf32>
    %10 = arith.mulf %1, %1 : vector<8x256xf32>
    %cst_6 = arith.constant dense<0.000000e+00> : vector<8xf32>
    %11 = vector.multi_reduction <add>, %10, %cst_6 [1] : vector<8x256xf32> to vector<8xf32>
    %12 = vector.shape_cast %11 : vector<8xf32> to vector<8x1xf32>
    %13 = arith.mulf %0, %1 : vector<8x256xf32>
    %cst_7 = arith.constant dense<0.000000e+00> : vector<8xf32>
    %14 = vector.multi_reduction <add>, %13, %cst_7 [1] : vector<8x256xf32> to vector<8xf32>
    %15 = vector.shape_cast %14 : vector<8xf32> to vector<8x1xf32>
    %16 = tpu.concatenate %4, %6, %9, %12, %15, %2, %2, %2 in 1 : vector<8x1xf32>, vector<8x1xf32>, vector<8x1xf32>, vector<8x1xf32>, vector<8x1xf32>, vector<8x1xf32>, vector<8x1xf32>, vector<8x1xf32> -> vector<8x8xf32>
    %c0_i32 = arith.constant 0 : i32
    %17 = arith.cmpi eq, %arg1, %c0_i32 : i32
    %18 = arith.extui %17 : i1 to i32
    %c0_i32_8 = arith.constant 0 : i32
    %19 = arith.cmpi ne, %18, %c0_i32_8 : i32
    scf.if %19 {
      %c0_11 = arith.constant 0 : index
      %c0_12 = arith.constant 0 : index
      %23 = vector.load %arg4[%c0_11, %c0_12] : memref<8x8xf32, #tpu.memory_space<vmem>>, vector<8x8xf32>
      tpu.vector_store %arg4[%c0_11, %c0_12], %16 {strides = array<i32>} : memref<8x8xf32, #tpu.memory_space<vmem>>, vector<8x8xf32>,
    } else {
    }
    %c0_i32_9 = arith.constant 0 : i32
    %20 = arith.cmpi sgt, %arg1, %c0_i32_9 : i32
    %21 = arith.extui %20 : i1 to i32
    %c0_i32_10 = arith.constant 0 : i32
    %22 = arith.cmpi ne, %21, %c0_i32_10 : i32
    scf.if %22 {
      %c0_11 = arith.constant 0 : index
      %c0_12 = arith.constant 0 : index
      %23 = vector.load %arg4[%c0_11, %c0_12] : memref<8x8xf32, #tpu.memory_space<vmem>>, vector<8x8xf32>
      %24 = arith.addf %23, %16 : vector<8x8xf32>
      %c0_13 = arith.constant 0 : index
      %c0_14 = arith.constant 0 : index
      %25 = vector.load %arg4[%c0_13, %c0_14] : memref<8x8xf32, #tpu.memory_space<vmem>>, vector<8x8xf32>
      tpu.vector_store %arg4[%c0_13, %c0_14], %24 {strides = array<i32>} : memref<8x8xf32, #tpu.memory_space<vmem>>, vector<8x8xf32>,
    } else {
    }
    return
  }
  func.func @transform_0(%arg0: i32, %arg1: i32) -> (i32, i32) {
    %c0_i32 = arith.constant 0 : i32
    return %arg0, %arg1 : i32, i32
  }
  func.func @transform_1(%arg0: i32, %arg1: i32) -> (i32, i32) {
    %c0_i32 = arith.constant 0 : i32
    return %arg0, %arg1 : i32, i32
  }
  func.func @transform_2(%arg0: i32, %arg1: i32) -> (i32, i32) {
    %c0_i32 = arith.constant 0 : i32
    %c0_i32_0 = arith.constant 0 : i32
    return %arg0, %c0_i32 : i32, i32
  }
}

module attributes {stable_mosaic.version = 11 : i64} {
  func.func @_apply_kernel(%arg0: i32, %arg1: i32, %arg2: memref<8x8xf32, #tpu.memory_space<vmem>>, %arg3: memref<8x256xf32, #tpu.memory_space<vmem>>, %arg4: memref<8x256xf32, #tpu.memory_space<vmem>>, %arg5: memref<8x256xf32, #tpu.memory_space<vmem>>, %arg6: memref<8x256xf32, #tpu.memory_space<vmem>>) attributes {dimension_semantics = [#tpu.dimension_semantics<parallel>, #tpu.dimension_semantics<parallel>], iteration_bounds = array<i64: 1, 1>, scalar_prefetch = 0 : i64, scratch_operands = 0 : i64, tpu.core_type = #tpu.core_type<tc>, window_params = [{transform_indices = @transform_0, window_bounds = array<i64: 8, 8>}, {transform_indices = @transform_1, window_bounds = array<i64: 8, 256>}, {transform_indices = @transform_2, window_bounds = array<i64: 8, 256>}, {transform_indices = @transform_3, window_bounds = array<i64: 8, 256>}, {transform_indices = @transform_4, window_bounds = array<i64: 8, 256>}]} {
    %c0 = arith.constant 0 : index
    %c0_0 = arith.constant 0 : index
    %0 = vector.load %arg3[%c0, %c0_0] : memref<8x256xf32, #tpu.memory_space<vmem>>, vector<8x256xf32>
    %c0_1 = arith.constant 0 : index
    %c0_2 = arith.constant 0 : index
    %1 = vector.load %arg4[%c0_1, %c0_2] : memref<8x256xf32, #tpu.memory_space<vmem>>, vector<8x256xf32>
    %c0_3 = arith.constant 0 : index
    %c0_4 = arith.constant 0 : index
    %2 = vector.load %arg2[%c0_3, %c0_4] : memref<8x8xf32, #tpu.memory_space<vmem>>, vector<8x8xf32>
    %3 = vector.extract_strided_slice %2 {offsets = [0, 0], sizes = [8, 1], strides = [1, 1]} : vector<8x8xf32> to vector<8x1xf32>
    %4 = vector.broadcast %3 : vector<8x1xf32> to vector<8x256xf32>
    %5 = arith.mulf %0, %4 : vector<8x256xf32>
    %6 = vector.extract_strided_slice %2 {offsets = [0, 1], sizes = [8, 1], strides = [1, 1]} : vector<8x8xf32> to vector<8x1xf32>
    %7 = vector.broadcast %6 : vector<8x1xf32> to vector<8x256xf32>
    %8 = arith.mulf %1, %7 : vector<8x256xf32>
    %9 = arith.addf %5, %8 : vector<8x256xf32>
    %10 = vector.extract_strided_slice %2 {offsets = [0, 4], sizes = [8, 1], strides = [1, 1]} : vector<8x8xf32> to vector<8x1xf32>
    %11 = vector.broadcast %10 : vector<8x1xf32> to vector<8x256xf32>
    %12 = arith.addf %9, %11 : vector<8x256xf32>
    %c0_5 = arith.constant 0 : index
    %c0_6 = arith.constant 0 : index
    %13 = vector.load %arg5[%c0_5, %c0_6] : memref<8x256xf32, #tpu.memory_space<vmem>>, vector<8x256xf32>
    tpu.vector_store %arg5[%c0_5, %c0_6], %12 {strides = array<i32>} : memref<8x256xf32, #tpu.memory_space<vmem>>, vector<8x256xf32>,
    %14 = vector.extract_strided_slice %2 {offsets = [0, 2], sizes = [8, 1], strides = [1, 1]} : vector<8x8xf32> to vector<8x1xf32>
    %15 = vector.broadcast %14 : vector<8x1xf32> to vector<8x256xf32>
    %16 = arith.mulf %0, %15 : vector<8x256xf32>
    %17 = vector.extract_strided_slice %2 {offsets = [0, 3], sizes = [8, 1], strides = [1, 1]} : vector<8x8xf32> to vector<8x1xf32>
    %18 = vector.broadcast %17 : vector<8x1xf32> to vector<8x256xf32>
    %19 = arith.mulf %1, %18 : vector<8x256xf32>
    %20 = arith.addf %16, %19 : vector<8x256xf32>
    %21 = vector.extract_strided_slice %2 {offsets = [0, 5], sizes = [8, 1], strides = [1, 1]} : vector<8x8xf32> to vector<8x1xf32>
    %22 = vector.broadcast %21 : vector<8x1xf32> to vector<8x256xf32>
    %23 = arith.addf %20, %22 : vector<8x256xf32>
    %c0_7 = arith.constant 0 : index
    %c0_8 = arith.constant 0 : index
    %24 = vector.load %arg6[%c0_7, %c0_8] : memref<8x256xf32, #tpu.memory_space<vmem>>, vector<8x256xf32>
    tpu.vector_store %arg6[%c0_7, %c0_8], %23 {strides = array<i32>} : memref<8x256xf32, #tpu.memory_space<vmem>>, vector<8x256xf32>,
    return
  }
  func.func @transform_0(%arg0: i32, %arg1: i32) -> (i32, i32) {
    %c0_i32 = arith.constant 0 : i32
    %c0_i32_0 = arith.constant 0 : i32
    return %arg0, %c0_i32 : i32, i32
  }
  func.func @transform_1(%arg0: i32, %arg1: i32) -> (i32, i32) {
    %c0_i32 = arith.constant 0 : i32
    return %arg0, %arg1 : i32, i32
  }
  func.func @transform_2(%arg0: i32, %arg1: i32) -> (i32, i32) {
    %c0_i32 = arith.constant 0 : i32
    return %arg0, %arg1 : i32, i32
  }
  func.func @transform_3(%arg0: i32, %arg1: i32) -> (i32, i32) {
    %c0_i32 = arith.constant 0 : i32
    return %arg0, %arg1 : i32, i32
  }
  func.func @transform_4(%arg0: i32, %arg1: i32) -> (i32, i32) {
    %c0_i32 = arith.constant 0 : i32
    return %arg0, %arg1 : i32, i32
  }
}

</mosaic_0001>

<bundles_post_ra>
// kernel: custom-call.1
= control target key start
LH: loop header
LB: loop body
LE: loop exit
PB: predicated region body
PF: predicated region fallthrough
CT: control target
= control target key end

     0   :  { %s56_s0 = inlined_call_operand.hbm [shape: c64[2,4,16,16], index: 0, kind: input, shape index: {}]   ;;  %s57_s1 = inlined_call_operand.vmem [shape: f32[2,4,16,16], index: 1, kind: output, shape index: {}]  }
   0x1   :  { %s2_s8 = scalar_lea.hbm %s56_s0, 128 }
   0x2   :  { %3 = vsyncpa [#allocation0], 0  ;;  %s5_s9 = sshll.u32 %s2_s8, 4  ;;  %s7_s12 = sshll.u32 %s57_s1, 4  ;;  %s6_s9 = int_to_ptr.hbm [resolvable:$true] %s5_s9  ;;  %s8_s12 = int_to_ptr.vmem [resolvable:$true] %s7_s12 }
   0x3   :  { %10 = dma.hbm_to_vmem [thread:$0]  %s6_s9, 2048, %s8_s12, [#allocation0] }
   0x4   :  { %38 = dma.done.wait [#allocation0], 2048  }
   0x5   :  { %39 = vsyncadd [#allocation0], 4294965248 }
   0x6   :  { %13 = vsyncpa [#allocation0], 1 }

// kernel: custom-call
= control target key start
LH: loop header
LB: loop body
LE: loop exit
PB: predicated region body
PF: predicated region fallthrough
CT: control target
= control target key end

     0   :  { %2 = vsyncpa [#allocation0], 0  ;;  %s55_s0 = inlined_call_operand.hbm [shape: c64[2,4,16,16], index: 0, kind: input, shape index: {}]   ;;  %s56_s1 = inlined_call_operand.vmem [shape: f32[2,4,16,16], index: 1, kind: output, shape index: {}]  }
   0x1   :  { %s4_s8 = sshll.u32 %s55_s0, 4  ;;  %s6_s11 = sshll.u32 %s56_s1, 4  ;;  %s5_s8 = int_to_ptr.hbm [resolvable:$true] %s4_s8  ;;  %s7_s11 = int_to_ptr.vmem [resolvable:$true] %s6_s11 }
   0x2   :  { %9 = dma.hbm_to_vmem [thread:$0]  %s5_s8, 2048, %s7_s11, [#allocation0] }
   0x3   :  { %37 = dma.done.wait [#allocation0], 2048  }
   0x4   :  { %38 = vsyncadd [#allocation0], 4294965248 }
   0x5   :  { %12 = vsyncpa [#allocation0], 1 }

// kernel: custom-call.2
= control target key start
LH: loop header
LB: loop body
LE: loop exit
PB: predicated region body
PF: predicated region fallthrough
CT: control target
= control target key end

     0   :  { %s105_s0 = inlined_call_operand.vmem [shape: f32[2,4,16,16], index: 0, kind: input, shape index: {}]   ;;  %s106_s1 = inlined_call_operand.vmem [shape: f32[2,4,16,16], index: 1, kind: input, shape index: {}]   ;;  %s107_s2 = inlined_call_operand.hbm [shape: c64[2,4,16,16], index: 2, kind: output, shape index: {}]  }
   0x1   :  { %s3_s11 = scalar_lea.hbm %s107_s2, 128 }
   0x2   :  { %4 = vsyncpa [#allocation0], 0  ;;  %s6_s14 = sshll.u32 %s105_s0, 4  ;;  %s8_s17 = sshll.u32 %s107_s2, 4  ;;  %s7_s14 = int_to_ptr.vmem [resolvable:$true] %s6_s14  ;;  %s9_s17 = int_to_ptr.hbm [resolvable:$true] %s8_s17 }
   0x3   :  { %11 = dma.vmem_to_hbm [thread:$0]  %s7_s14, 2048, %s9_s17, [#allocation0] }
   0x4   :  { %74 = dma.done.wait [#allocation0], 2048  }
   0x5   :  { %75 = vsyncadd [#allocation0], 4294965248 }
   0x6   :  { %14 = vsyncpa [#allocation0], 1 }
   0x7   :  { %15 = vsyncpa [#allocation1], 0  ;;  %s17_s20 = sshll.u32 %s106_s1, 4  ;;  %s19_s21 = sshll.u32 %s3_s11, 4  ;;  %s18_s20 = int_to_ptr.vmem [resolvable:$true] %s17_s20  ;;  %s20_s21 = int_to_ptr.hbm [resolvable:$true] %s19_s21 }
   0x8   :  { %22 = dma.vmem_to_hbm [thread:$0]  %s18_s20, 2048, %s20_s21, [#allocation1] }
   0x9   :  { %76 = dma.done.wait [#allocation1], 2048  }
   0xa   :  { %77 = vsyncadd [#allocation1], 4294965248 }
   0xb   :  { %25 = vsyncpa [#allocation1], 1 }

// kernel: complex_batch_norm.2
= control target key start
LH: loop header
LB: loop body
LE: loop exit
PB: predicated region body
PF: predicated region fallthrough
CT: control target
= control target key end

     0   :  { %vm36_vm0 = vcmask 7168   ;;  %vm38_vm1 = vcmask 15360   ;;  %vm40_vm2 = vcmask 23552   ;;  %vm42_vm3 = vcmask 31744   ;;  %s98_s0 = inlined_call_operand.vmem [shape: f32[8,256], index: 0, kind: input, shape index: {}]   ;;  %s99_s1 = inlined_call_operand.vmem [shape: f32[8,256], index: 1, kind: input, shape index: {}]   ;;  %s100_s2 = inlined_call_operand.vmem [shape: f32[8,8], index: 2, kind: output, shape index: {}]  }
   0x1   :  { %v11_v0 = vld [vmem:[%s98_s0] sm:$0xff]  ;;  %v12_v1 = vld [vmem:[%s98_s0 + $0x8] sm:$0xff]  ;;  %vm44_vm4 = vcmask 39936   ;;  %vm46_vm5 = vcmask 48128   ;;  %vm48_vm6 = vcmask 56320   ;;  %vm54_vm7 = vcmask 64512  }
   0x2   :  { %v13_v2 = vld [vmem:[%s99_s1] sm:$0xff]  ;;  %v15_v3 = vadd.f32 %v12_v1, %v11_v0  ;;  %v21_v4 = vmul.f32 %v11_v0, %v11_v0  ;;  %v22_v5 = vmul.f32 %v12_v1, %v12_v1  ;;  %v14_v6 = vld [vmem:[%s99_s1 + $0x8] sm:$0xff] }
   0x3   :  { %v31_v7 = vmul.f32 %v13_v2, %v11_v0  ;;  %v32_v8 = vmul.f32 %v14_v6, %v12_v1  ;;  %v26_v11 = vmul.f32 %v13_v2, %v13_v2  ;;  %v27_v12 = vmul.f32 %v14_v6, %v14_v6 }
   0x4   :  { %16 = vadd.xlane.f32.xlu0 %v15_v3  ;;  %v23_v9 = vadd.f32 %v22_v5, %v21_v4  ;;  %v18_v13 = vadd.f32 %v14_v6, %v13_v2 }
   0x5   :  { %v33_v10 = vadd.f32 %v32_v8, %v31_v7  ;;  %v28_v14 = vadd.f32 %v27_v12, %v26_v11 }
   0x6   :  { %24 = vadd.xlane.f32.xlu1 %v23_v9 }
   0x7   :  { %34 = vadd.xlane.f32.xlu2 %v33_v10 }
   0xc   :  { %19 = vadd.xlane.f32.xlu0 %v18_v13 }
   0xe   :  { %29 = vadd.xlane.f32.xlu1 %v28_v14 }
  0x77   :  { %v17_v15 = vpop.xlane.xlu0 %16 }
  0x79   :  { %v25_v16 = vpop.xlane.xlu1 %24 }
  0x7a   :  { %v35_v19 = vpop.xlane.xlu2 %34 }
  0x7f   :  { %v20_v17 = vpop.xlane.xlu0 %19 }
  0x80   :  { %v37_v18 = vsel %vm36_vm0, %v17_v15, %v20_v17 }
  0x81   :  { %v30_v20 = vpop.xlane.xlu1 %29  ;;  %v39_v21 = vsel %vm38_vm1, %v37_v18, %v25_v16 }
  0x82   :  { %v41_v22 = vsel %vm40_vm2, %v39_v21, %v30_v20 }
  0x83   :  { %v43_v23 = vsel %vm42_vm3, %v41_v22, %v35_v19 }
  0x84   :  { %v45_v24 = vsel %vm44_vm4, %v43_v23, 0.0 }
  0x85   :  { %v47_v25 = vsel %vm46_vm5, %v45_v24, 0.0 }
  0x86   :  { %v49_v26 = vsel %vm48_vm6, %v47_v25, 0.0 }
  0x87   :  { %55 = vst.msk [vmem:[%s100_s2] sm:$0xff] %vm54_vm7, %v49_v26 }

// kernel: complex_batch_norm.3
= control target key start
LH: loop header
LB: loop body
LE: loop exit
PB: predicated region body
PF: predicated region fallthrough
CT: control target
= control target key end

     0   :  { %v87_v0 = vmov 2   ;;  %v88_v1 = vmov 0   ;;  %v89_v3 = vmov 4   ;;  %v90_v4 = vmov 3   ;;  %s145_s0 = inlined_call_operand.vmem [shape: f32[8,8], index: 0, kind: input, shape index: {}]   ;;  %s146_s1 = inlined_call_operand.vmem [shape: f32[8,256], index: 1, kind: input, shape index: {}]   ;;  %s147_s2 = inlined_call_operand.vmem [shape: f32[8,256], index: 2, kind: input, shape index: {}]   ;;  %s148_s3 = inlined_call_operand.vmem [shape: f32[8,256], index: 3, kind: output, shape index: {0}]   ;;  %s149_s4 = inlined_call_operand.vmem [shape: f32[8,256], index: 4, kind: output, shape index: {1}]  }
   0x1   :  { %82 = vset.pattern.permute.xlu1 %v87_v0  ;;  %80 = vset.pattern.permute.xlu0 %v88_v1  ;;  %v20_v2 = vld [vmem:[%s145_s0] sm:$0xff]  ;;  %v91_v5 = vmov 1   ;;  %v92_v6 = vmov 5   ;;  %v17_v11 = vld [vmem:[%s146_s1 + $0x8] sm:$0xff] }
   0x2   :  { %45 = vperm.xlu1 %82, %v20_v2   ;;  %23 = vperm.xlu0 %80, %v20_v2   ;;  %v16_v10 = vld [vmem:[%s146_s1] sm:$0xff]  ;;  %v19_v13 = vld [vmem:[%s147_s2 + $0x8] sm:$0xff] }
   0x3   :  { %84 = vset.pattern.permute.xlu2 %v89_v3  ;;  %v18_v12 = vld [vmem:[%s147_s2] sm:$0xff] }
   0x4   :  { %37 = vperm.xlu2 %84, %v20_v2  }
   0xa   :  { %83 = vset.pattern.permute.xlu1 %v90_v4  ;;  %81 = vset.pattern.permute.xlu0 %v91_v5 }
   0xb   :  { %51 = vperm.xlu1 %83, %v20_v2   ;;  %29 = vperm.xlu0 %81, %v20_v2  }
   0xc   :  { %85 = vset.pattern.permute.xlu2 %v92_v6 }
   0xd   :  { %59 = vperm.xlu2 %85, %v20_v2  }
  0x13   :  { %86 = vset.pattern.permute.xlu0 %v92_v6 }
  0x5e   :  { %v38_v9 = vpop.permute.xlu2 %37 }
  0x67   :  { %v60_v24 = vpop.permute.xlu2 %59 }
  0x74   :  { %v46_v7 = vpop.permute.xlu1 %45  ;;  %v24_v8 = vpop.permute.xlu0 %23 }
  0x75   :  { %v48_v14 = vmul.f32 %v46_v7, %v16_v10  ;;  %v49_v15 = vmul.f32 %v46_v7, %v17_v11  ;;  %v26_v16 = vmul.f32 %v24_v8, %v16_v10  ;;  %v27_v17 = vmul.f32 %v24_v8, %v17_v11 }
  0x7d   :  { %v52_v18 = vpop.permute.xlu1 %51  ;;  %v30_v19 = vpop.permute.xlu0 %29 }
  0x7e   :  { %v54_v20 = vmul.f32 %v52_v18, %v18_v12  ;;  %v55_v21 = vmul.f32 %v52_v18, %v19_v13  ;;  %v32_v22 = vmul.f32 %v30_v19, %v18_v12  ;;  %v33_v23 = vmul.f32 %v30_v19, %v19_v13 }
  0x80   :  { %v34_v25 = vadd.f32 %v32_v22, %v26_v16  ;;  %v35_v26 = vadd.f32 %v33_v23, %v27_v17  ;;  %v56_v27 = vadd.f32 %v54_v20, %v48_v14  ;;  %v57_v28 = vadd.f32 %v55_v21, %v49_v15 }
  0x82   :  { %v40_v29 = vadd.f32 %v38_v9, %v34_v25  ;;  %v41_v30 = vadd.f32 %v38_v9, %v35_v26  ;;  %v62_v31 = vadd.f32 %v60_v24, %v56_v27  ;;  %v63_v32 = vadd.f32 %v60_v24, %v57_v28 }
  0x84   :  { %42 = vst [vmem:[%s148_s3] sm:$0xff] %v40_v29 }
  0x85   :  { %43 = vst [vmem:[%s148_s3 + $0x8] sm:$0xff] %v41_v30 }
  0x86   :  { %64 = vst [vmem:[%s149_s4] sm:$0xff] %v62_v31 }
  0x87   :  { %65 = vst [vmem:[%s149_s4 + $0x8] sm:$0xff] %v63_v32 }

</bundles_post_ra>
